<compile_context>
chip_gen: v7x
topology: tpu7x:2x2x1
jax: 0.10.0
libtpu: 0.0.40
codegen_flags: <defaults>
</compile_context>

<pallas_src>
import functools

import jax
import jax.numpy as jnp
from jax import lax
from jax.experimental import pallas as pl
from jax.experimental.pallas import tpu as pltpu


# ----------------------------------------------------------------------------
# Kernel
# ----------------------------------------------------------------------------
def basic_block_kernel(x_ref, w1_ref, w2_ref, sh1_ref, sh2_ref, out_ref, *, img_h):
    # x_ref / out_ref : (NB*H, W*C) f32, lane-merged NHWC rows (NB stacked images)
    # w*_ref          : (W*C, 3*W*C) bf16 banded conv weights [Wkh0|Wkh1|Wkh2],
    #                   BN scale folded in
    # sh*_ref         : (1, W*C) f32 per-channel BN shift tiled over W
    M, WC = out_ref.shape
    H = img_h

    # Per-image height-boundary masks (zero padding rows of each stacked image).
    row = lax.broadcasted_iota(jnp.int32, (M, WC), 0)
    not_first = (row % H) != 0          # row h-1 exists within the same image
    not_last = (row % H) != (H - 1)     # row h+1 exists within the same image

    def conv3x3(a_bf16, w_ref):
        # Single wide MXU matmul: (M, WC) x (WC, 3*WC) -> (M, 3*WC), f32 accum.
        y = jnp.dot(a_bf16, w_ref[...], preferred_element_type=jnp.float32)
        y0 = y[:, 0 * WC:1 * WC]        # kh = 0 tap  (needs row h-1)
        y1 = y[:, 1 * WC:2 * WC]        # kh = 1 tap  (row h)
        y2 = y[:, 2 * WC:3 * WC]        # kh = 2 tap  (needs row h+1)
        # Height taps via XLU sublane roll + boundary masking (free next to MXU/VPU).
        up = jnp.where(not_first, pltpu.roll(y0, 1, axis=0), 0.0)
        dn = jnp.where(not_last, pltpu.roll(y2, M - 1, axis=0), 0.0)
        return y1 + up + dn

    # conv1 -> bn1 (shift only; scale folded) -> relu
    h1 = jnp.maximum(conv3x3(x_ref[...].astype(jnp.bfloat16), w1_ref) + sh1_ref[0], 0.0)

    # conv2 -> bn2 (shift only) -> + residual -> relu
    # Residual is re-read here (not held live across both convs).
    h2 = conv3x3(h1.astype(jnp.bfloat16), w2_ref) + sh2_ref[0] + x_ref[...]
    out_ref[...] = jnp.maximum(h2, 0.0).astype(out_ref.dtype)


# ----------------------------------------------------------------------------
# One-time parameter preprocessing (init time, NOT in the per-forward hot path)
# ----------------------------------------------------------------------------
def _band_weight_cat(w_hwio, W):
    """Lower a 3x3, stride-1, pad-1 conv over the width axis into a banded
    matrix on the lane-merged (W*Cin) layout, concatenating the 3 kernel rows
    along the output axis -> (W*Cin, 3*W*Cout).  Width zero-padding is folded
    in (out-of-range taps have zero weight)."""
    KH, KW, Cin, Cout = w_hwio.shape
    wi = jnp.arange(W)[None, :, None]                  # input width index
    wo = jnp.arange(W)[None, None, :]                  # output width index
    kw = jnp.arange(KW)[:, None, None]
    sel = (wi == wo + kw - 1).astype(w_hwio.dtype)     # (KW, W, W) band selector
    band = jnp.einsum('hkio,kxw->hxiwo', w_hwio, sel)  # (KH, W, Cin, W, Cout)
    band = band.reshape(KH, W * Cin, W * Cout)
    return jnp.concatenate([band[0], band[1], band[2]], axis=1)


def prepare_basic_block_params(params, W, eps=1e-5):
    """BN inference fold + OIHW->HWIO + width banding + bf16 cast, done once."""
    def fold(wkey, g, b, m, v):
        s = params[g] / jnp.sqrt(params[v] + eps)
        shift = params[b] - params[m] * s
        w = jnp.transpose(params[wkey], (2, 3, 1, 0)) * s     # HWIO, scale folded
        wband = _band_weight_cat(w, W).astype(jnp.bfloat16)   # bf16 MXU operand
        return wband, jnp.tile(shift, W)[None, :].astype(jnp.float32)

    w1b, sh1 = fold("conv1_w", "bn1_gamma", "bn1_beta", "bn1_mean", "bn1_var")
    w2b, sh2 = fold("conv2_w", "bn2_gamma", "bn2_beta", "bn2_mean", "bn2_var")
    return {"w1b": w1b, "w2b": w2b, "sh1": sh1, "sh2": sh2}


# ----------------------------------------------------------------------------
# Forward (hot path): lane-merged NHWC end-to-end
# ----------------------------------------------------------------------------
def _images_per_block(n, h):
    """Images per grid step: fill the MXU (target <=256 rows per matmul) while
    keeping >=1 'parallel' grid block per TensorCore (v7x: 2 TCs; v5e/v6e: 1)."""
    try:
        kind = jax.devices()[0].device_kind.lower()
    except Exception:  # pragma: no cover
        kind = ""
    num_tc = 2 if "v7" in kind else 1
    nb = max(1, min(n, max(1, 256 // h)))
    while n % nb != 0 or (n // nb) < min(num_tc, n):
        nb -= 1
    return nb


@jax.jit
def basic_block_forward_nhwc(x_nhwc, prepped):
    """BasicBlock forward on NHWC input (N, H, W, C) -> (N, H, W, C)."""
    N, H, W, C = x_nhwc.shape
    WC = W * C
    nb = _images_per_block(N, H)        # images per grid step
    num_blocks = N // nb
    rows = nb * H                       # MXU M-dimension per step

    x_m = x_nhwc.reshape(N * H, WC)     # free contiguous merge (lane-dense)

    # NOTE: weight/shift specs are grid-invariant; at real ResNet sizes mark
    # them pipeline_mode=pl.Buffered(1) and set vmem_limit_bytes with headroom.
    out_m = pl.pallas_call(
        functools.partial(basic_block_kernel, img_h=H),
        out_shape=jax.ShapeDtypeStruct((N * H, WC), x_nhwc.dtype),
        grid_spec=pltpu.PrefetchScalarGridSpec(
            num_scalar_prefetch=0,
            grid=(num_blocks,),
            in_specs=[
                pl.BlockSpec((rows, WC), lambda i: (i, 0)),
                pl.BlockSpec(prepped["w1b"].shape, lambda i: (0, 0)),
                pl.BlockSpec(prepped["w2b"].shape, lambda i: (0, 0)),
                pl.BlockSpec((1, WC), lambda i: (0, 0)),
                pl.BlockSpec((1, WC), lambda i: (0, 0)),
            ],
            out_specs=pl.BlockSpec((rows, WC), lambda i: (i, 0)),
        ),
        compiler_params=pltpu.CompilerParams(
            dimension_semantics=("parallel",)),   # shards blocks across TCs on v7x
    )(x_m, prepped["w1b"], prepped["w2b"], prepped["sh1"], prepped["sh2"])

    return out_m.reshape(N, H, W, C)


def basic_block_forward_nchw(x_nchw, prepped):
    """Interface-parity wrapper matching the PyTorch NCHW layout.  The
    transposes here are the cost of the NCHW interface and sit outside the
    fused kernel; prefer the NHWC entry point end-to-end."""
    x_nhwc = jnp.transpose(x_nchw, (0, 2, 3, 1))
    return jnp.transpose(basic_block_forward_nhwc(x_nhwc, prepped), (0, 3, 1, 2))


# ----------------------------------------------------------------------------
# Pure-JAX reference (correctness check, NHWC)
# ----------------------------------------------------------------------------
def basic_block_reference_nhwc(x_nhwc, params, eps=1e-5):
    def conv(x, w_oihw):
        w = jnp.transpose(w_oihw, (2, 3, 1, 0))   # OIHW -> HWIO
        return lax.conv_general_dilated(
            x, w, window_strides=(1, 1), padding=((1, 1), (1, 1)),
            dimension_numbers=("NHWC", "HWIO", "NHWC"))

    def bn(x, g, b, m, v):
        return (x - m) / jnp.sqrt(v + eps) * g + b

    out = conv(x_nhwc, params["conv1_w"])
    out = bn(out, params["bn1_gamma"], params["bn1_beta"],
             params["bn1_mean"], params["bn1_var"])
    out = jnp.maximum(out, 0.0)
    out = conv(out, params["conv2_w"])
    out = bn(out, params["bn2_gamma"], params["bn2_beta"],
             params["bn2_mean"], params["bn2_var"])
    out = out + x_nhwc
    return jnp.maximum(out, 0.0)


# ----------------------------------------------------------------------------
# Main
# ----------------------------------------------------------------------------
if __name__ == "__main__":
    N, C, H, W = 2, 8, 16, 16   # inplanes == planes, stride=1 -> W*C = 128 lanes
    key = jax.random.PRNGKey(0)
    ks = jax.random.split(key, 11)

    params = {
        "conv1_w": 0.1 * jax.random.normal(ks[0], (C, C, 3, 3), jnp.float32),
        "conv2_w": 0.1 * jax.random.normal(ks[1], (C, C, 3, 3), jnp.float32),
        "bn1_gamma": 1.0 + 0.1 * jax.random.normal(ks[2], (C,), jnp.float32),
        "bn1_beta": 0.1 * jax.random.normal(ks[3], (C,), jnp.float32),
        "bn1_mean": 0.05 * jax.random.normal(ks[4], (C,), jnp.float32),
        "bn1_var": 1.0 + 0.1 * jnp.abs(jax.random.normal(ks[5], (C,), jnp.float32)),
        "bn2_gamma": 1.0 + 0.1 * jax.random.normal(ks[6], (C,), jnp.float32),
        "bn2_beta": 0.1 * jax.random.normal(ks[7], (C,), jnp.float32),
        "bn2_mean": 0.05 * jax.random.normal(ks[8], (C,), jnp.float32),
        "bn2_var": 1.0 + 0.1 * jnp.abs(jax.random.normal(ks[9], (C,), jnp.float32)),
    }

    # One-time parameter preprocessing (init time).
    prepped = jax.block_until_ready(prepare_basic_block_params(params, W))

    x_nhwc = jax.random.normal(ks[10], (N, H, W, C), jnp.float32)

    out = jax.block_until_ready(basic_block_forward_nhwc(x_nhwc, prepped))
    ref = basic_block_reference_nhwc(x_nhwc, params)

    assert out.shape == (N, H, W, C)
    max_err = float(jnp.max(jnp.abs(out - ref)))
    # bf16 MXU operands (f32 accumulation) -> loosened tolerance vs f32 reference.
    assert jnp.allclose(out, ref, atol=5e-2, rtol=5e-2), max_err

    # NCHW interface parity with the PyTorch module.
    x_nchw = jnp.transpose(x_nhwc, (0, 3, 1, 2))
    out_nchw = jax.block_until_ready(basic_block_forward_nchw(x_nchw, prepped))
    assert out_nchw.shape == (N, C, H, W)
    assert jnp.allclose(out_nchw, jnp.transpose(ref, (0, 3, 1, 2)),
                        atol=5e-2, rtol=5e-2)

    print("KERNEL_OK")
</pallas_src>

<mosaic_0001>
module attributes {stable_mosaic.version = 11 : i64} {
  func.func @basic_block_kernel(%arg0: i32, %arg1: memref<32x128xf32, #tpu.memory_space<vmem>>, %arg2: memref<128x384xbf16, #tpu.memory_space<vmem>>, %arg3: memref<128x384xbf16, #tpu.memory_space<vmem>>, %arg4: memref<1x128xf32, #tpu.memory_space<vmem>>, %arg5: memref<1x128xf32, #tpu.memory_space<vmem>>, %arg6: memref<32x128xf32, #tpu.memory_space<vmem>>) attributes {dimension_semantics = [#tpu.dimension_semantics<parallel>], iteration_bounds = array<i64: 1>, scalar_prefetch = 0 : i64, scratch_operands = 0 : i64, tpu.core_type = #tpu.core_type<tc>, window_params = [{transform_indices = @transform_0, window_bounds = array<i64: 32, 128>}, {pipeline_mode = #tpu.pipeline_mode<synchronous>, transform_indices = @transform_1, window_bounds = array<i64: 128, 384>}, {pipeline_mode = #tpu.pipeline_mode<synchronous>, transform_indices = @transform_2, window_bounds = array<i64: 128, 384>}, {pipeline_mode = #tpu.pipeline_mode<synchronous>, transform_indices = @transform_3, window_bounds = array<i64: 1, 128>}, {pipeline_mode = #tpu.pipeline_mode<synchronous>, transform_indices = @transform_4, window_bounds = array<i64: 1, 128>}, {transform_indices = @transform_5, window_bounds = array<i64: 32, 128>}]} {
    %0 = tpu.iota {dimensions = array<i32: 0>} : vector<32x128xi32>
    %c16_i32 = arith.constant 16 : i32
    %c0_i32 = arith.constant 0 : i32
    %1 = arith.cmpi eq, %c16_i32, %c0_i32 : i32
    %c1_i32 = arith.constant 1 : i32
    %2 = arith.select %1, %c1_i32, %c16_i32 : i32
    %3 = vector.broadcast %2 : i32 to vector<32x128xi32>
    %4 = arith.remsi %0, %3 : vector<32x128xi32>
    %c0_i32_0 = arith.constant 0 : i32
    %5 = vector.broadcast %c0_i32_0 : i32 to vector<32x128xi32>
    %6 = arith.cmpi ne, %4, %5 : vector<32x128xi32>
    %c0_i32_1 = arith.constant 0 : i32
    %7 = vector.broadcast %c0_i32_1 : i32 to vector<32x128xi32>
    %8 = arith.cmpi slt, %4, %7 : vector<32x128xi32>
    %c0_i32_2 = arith.constant 0 : i32
    %9 = arith.cmpi slt, %2, %c0_i32_2 : i32
    %10 = vector.broadcast %9 : i1 to vector<32x128xi1>
    %11 = vector.broadcast %10 : vector<32x128xi1> to vector<32x128xi1>
    %12 = arith.xori %8, %11 : vector<32x128xi1>
    %13 = arith.andi %12, %6 : vector<32x128xi1>
    %14 = vector.broadcast %2 : i32 to vector<32x128xi32>
    %15 = arith.addi %4, %14 : vector<32x128xi32>
    %16 = arith.select %13, %15, %4 : vector<32x128xi1>, vector<32x128xi32>
    %c0_i32_3 = arith.constant 0 : i32
    %17 = vector.broadcast %c0_i32_3 : i32 to vector<32x128xi32>
    %18 = arith.cmpi ne, %16, %17 : vector<32x128xi32>
    %c16_i32_4 = arith.constant 16 : i32
    %c0_i32_5 = arith.constant 0 : i32
    %19 = arith.cmpi eq, %c16_i32_4, %c0_i32_5 : i32
    %c1_i32_6 = arith.constant 1 : i32
    %20 = arith.select %19, %c1_i32_6, %c16_i32_4 : i32
    %21 = vector.broadcast %20 : i32 to vector<32x128xi32>
    %22 = arith.remsi %0, %21 : vector<32x128xi32>
    %c0_i32_7 = arith.constant 0 : i32
    %23 = vector.broadcast %c0_i32_7 : i32 to vector<32x128xi32>
    %24 = arith.cmpi ne, %22, %23 : vector<32x128xi32>
    %c0_i32_8 = arith.constant 0 : i32
    %25 = vector.broadcast %c0_i32_8 : i32 to vector<32x128xi32>
    %26 = arith.cmpi slt, %22, %25 : vector<32x128xi32>
    %c0_i32_9 = arith.constant 0 : i32
    %27 = arith.cmpi slt, %20, %c0_i32_9 : i32
    %28 = vector.broadcast %27 : i1 to vector<32x128xi1>
    %29 = vector.broadcast %28 : vector<32x128xi1> to vector<32x128xi1>
    %30 = arith.xori %26, %29 : vector<32x128xi1>
    %31 = arith.andi %30, %24 : vector<32x128xi1>
    %32 = vector.broadcast %20 : i32 to vector<32x128xi32>
    %33 = arith.addi %22, %32 : vector<32x128xi32>
    %34 = arith.select %31, %33, %22 : vector<32x128xi1>, vector<32x128xi32>
    %c15_i32 = arith.constant 15 : i32
    %35 = vector.broadcast %c15_i32 : i32 to vector<32x128xi32>
    %36 = arith.cmpi ne, %34, %35 : vector<32x128xi32>
    %c0 = arith.constant 0 : index
    %c0_10 = arith.constant 0 : index
    %37 = vector.load %arg1[%c0, %c0_10] : memref<32x128xf32, #tpu.memory_space<vmem>>, vector<32x128xf32>
    %38 = arith.truncf %37 : vector<32x128xf32> to vector<32x128xbf16>
    %c0_11 = arith.constant 0 : index
    %c0_12 = arith.constant 0 : index
    %39 = vector.load %arg2[%c0_11, %c0_12] : memref<128x384xbf16, #tpu.memory_space<vmem>>, vector<128x384xbf16>
    %cst = arith.constant dense<0.000000e+00> : vector<32x384xf32>
    %40 = tpu.matmul %38, %39, %cst {dimension_numbers = #tpu.dot_dimension_numbers<[1], [0], [0], [1], [0, 0, 1, 1], [], []>} : vector<32x128xbf16>, vector<128x384xbf16>, vector<32x384xf32> -> vector<32x384xf32>
    %41 = vector.extract_strided_slice %40 {offsets = [0, 0], sizes = [32, 128], strides = [1, 1]} : vector<32x384xf32> to vector<32x128xf32>
    %42 = vector.extract_strided_slice %40 {offsets = [0, 128], sizes = [32, 128], strides = [1, 1]} : vector<32x384xf32> to vector<32x128xf32>
    %43 = vector.extract_strided_slice %40 {offsets = [0, 256], sizes = [32, 128], strides = [1, 1]} : vector<32x384xf32> to vector<32x128xf32>
    %c1_i32_13 = arith.constant 1 : i32
    %44 = tpu.dynamic_rotate %41 by %c1_i32_13 dim 0 : vector<32x128xf32>, i32 -> vector<32x128xf32>
    %cst_14 = arith.constant 0.000000e+00 : f32
    %45 = vector.broadcast %cst_14 : f32 to vector<32x128xf32>
    %46 = arith.select %18, %44, %45 : vector<32x128xi1>, vector<32x128xf32>
    %c31_i32 = arith.constant 31 : i32
    %47 = tpu.dynamic_rotate %43 by %c31_i32 dim 0 : vector<32x128xf32>, i32 -> vector<32x128xf32>
    %cst_15 = arith.constant 0.000000e+00 : f32
    %48 = vector.broadcast %cst_15 : f32 to vector<32x128xf32>
    %49 = arith.select %36, %47, %48 : vector<32x128xi1>, vector<32x128xf32>
    %50 = arith.addf %42, %46 : vector<32x128xf32>
    %51 = arith.addf %50, %49 : vector<32x128xf32>
    %c0_16 = arith.constant 0 : index
    %c0_17 = arith.constant 0 : index
    %52 = vector.load %arg4[%c0_16, %c0_17] : memref<1x128xf32, #tpu.memory_space<vmem>>, vector<1x128xf32>
    %53 = vector.shape_cast %52 : vector<1x128xf32> to vector<128xf32>
    %54 = vector.shape_cast %53 : vector<128xf32> to vector<1x128xf32>
    %55 = vector.broadcast %54 : vector<1x128xf32> to vector<32x128xf32>
    %56 = arith.addf %51, %55 : vector<32x128xf32>
    %cst_18 = arith.constant 0.000000e+00 : f32
    %57 = vector.broadcast %cst_18 : f32 to vector<32x128xf32>
    %58 = arith.maximumf %56, %57 : vector<32x128xf32>
    %59 = arith.truncf %58 : vector<32x128xf32> to vector<32x128xbf16>
    %c0_19 = arith.constant 0 : index
    %c0_20 = arith.constant 0 : index
    %60 = vector.load %arg3[%c0_19, %c0_20] : memref<128x384xbf16, #tpu.memory_space<vmem>>, vector<128x384xbf16>
    %cst_21 = arith.constant dense<0.000000e+00> : vector<32x384xf32>
    %61 = tpu.matmul %59, %60, %cst_21 {dimension_numbers = #tpu.dot_dimension_numbers<[1], [0], [0], [1], [0, 0, 1, 1], [], []>} : vector<32x128xbf16>, vector<128x384xbf16>, vector<32x384xf32> -> vector<32x384xf32>
    %62 = vector.extract_strided_slice %61 {offsets = [0, 0], sizes = [32, 128], strides = [1, 1]} : vector<32x384xf32> to vector<32x128xf32>
    %63 = vector.extract_strided_slice %61 {offsets = [0, 128], sizes = [32, 128], strides = [1, 1]} : vector<32x384xf32> to vector<32x128xf32>
    %64 = vector.extract_strided_slice %61 {offsets = [0, 256], sizes = [32, 128], strides = [1, 1]} : vector<32x384xf32> to vector<32x128xf32>
    %c1_i32_22 = arith.constant 1 : i32
    %65 = tpu.dynamic_rotate %62 by %c1_i32_22 dim 0 : vector<32x128xf32>, i32 -> vector<32x128xf32>
    %cst_23 = arith.constant 0.000000e+00 : f32
    %66 = vector.broadcast %cst_23 : f32 to vector<32x128xf32>
    %67 = arith.select %18, %65, %66 : vector<32x128xi1>, vector<32x128xf32>
    %c31_i32_24 = arith.constant 31 : i32
    %68 = tpu.dynamic_rotate %64 by %c31_i32_24 dim 0 : vector<32x128xf32>, i32 -> vector<32x128xf32>
    %cst_25 = arith.constant 0.000000e+00 : f32
    %69 = vector.broadcast %cst_25 : f32 to vector<32x128xf32>
    %70 = arith.select %36, %68, %69 : vector<32x128xi1>, vector<32x128xf32>
    %71 = arith.addf %63, %67 : vector<32x128xf32>
    %72 = arith.addf %71, %70 : vector<32x128xf32>
    %c0_26 = arith.constant 0 : index
    %c0_27 = arith.constant 0 : index
    %73 = vector.load %arg5[%c0_26, %c0_27] : memref<1x128xf32, #tpu.memory_space<vmem>>, vector<1x128xf32>
    %74 = vector.shape_cast %73 : vector<1x128xf32> to vector<128xf32>
    %75 = vector.shape_cast %74 : vector<128xf32> to vector<1x128xf32>
    %76 = vector.broadcast %75 : vector<1x128xf32> to vector<32x128xf32>
    %77 = arith.addf %72, %76 : vector<32x128xf32>
    %c0_28 = arith.constant 0 : index
    %c0_29 = arith.constant 0 : index
    %78 = vector.load %arg1[%c0_28, %c0_29] : memref<32x128xf32, #tpu.memory_space<vmem>>, vector<32x128xf32>
    %79 = arith.addf %77, %78 : vector<32x128xf32>
    %cst_30 = arith.constant 0.000000e+00 : f32
    %80 = vector.broadcast %cst_30 : f32 to vector<32x128xf32>
    %81 = arith.maximumf %79, %80 : vector<32x128xf32>
    %c0_31 = arith.constant 0 : index
    %c0_32 = arith.constant 0 : index
    %82 = vector.load %arg6[%c0_31, %c0_32] : memref<32x128xf32, #tpu.memory_space<vmem>>, vector<32x128xf32>
    tpu.vector_store %arg6[%c0_31, %c0_32], %81 {strides = array<i32>} : memref<32x128xf32, #tpu.memory_space<vmem>>, vector<32x128xf32>,
    return
  }
  func.func @transform_0(%arg0: i32) -> (i32, i32) {
    %c0_i32 = arith.constant 0 : i32
    %c0_i32_0 = arith.constant 0 : i32
    return %arg0, %c0_i32 : i32, i32
  }
  func.func @transform_1(%arg0: i32) -> (i32, i32) {
    %c0_i32 = arith.constant 0 : i32
    %c0_i32_0 = arith.constant 0 : i32
    %c0_i32_1 = arith.constant 0 : i32
    return %c0_i32, %c0_i32_0 : i32, i32
  }
  func.func @transform_2(%arg0: i32) -> (i32, i32) {
    %c0_i32 = arith.constant 0 : i32
    %c0_i32_0 = arith.constant 0 : i32
    %c0_i32_1 = arith.constant 0 : i32
    return %c0_i32, %c0_i32_0 : i32, i32
  }
  func.func @transform_3(%arg0: i32) -> (i32, i32) {
    %c0_i32 = arith.constant 0 : i32
    %c0_i32_0 = arith.constant 0 : i32
    %c0_i32_1 = arith.constant 0 : i32
    return %c0_i32, %c0_i32_0 : i32, i32
  }
  func.func @transform_4(%arg0: i32) -> (i32, i32) {
    %c0_i32 = arith.constant 0 : i32
    %c0_i32_0 = arith.constant 0 : i32
    %c0_i32_1 = arith.constant 0 : i32
    return %c0_i32, %c0_i32_0 : i32, i32
  }
  func.func @transform_5(%arg0: i32) -> (i32, i32) {
    %c0_i32 = arith.constant 0 : i32
    %c0_i32_0 = arith.constant 0 : i32
    return %arg0, %c0_i32 : i32, i32
  }
}

</mosaic_0001>

<bundles_post_ra>
// kernel: basic_block_forward_nhwc.1
= control target key start
LH: loop header
LB: loop body
LE: loop exit
PB: predicated region body
PF: predicated region fallthrough
CT: control target
= control target key end

     0   :  { %v897_v1 = vmov 0   ;;  %v21_v55 = vlaneseq  ;;  %s1194_s1 = inlined_call_operand.vmem [shape: bf16[128,384], index: 1, kind: input, shape index: {}]   ;;  %s1195_s0 = inlined_call_operand.vmem [shape: f32[32,128], index: 0, kind: input, shape index: {}]   ;;  %s1196_s2 = inlined_call_operand.vmem [shape: bf16[128,384], index: 2, kind: input, shape index: {}]   ;;  %s1197_s3 = inlined_call_operand.vmem [shape: f32[1,128], index: 3, kind: input, shape index: {}]   ;;  %s1198_s4 = inlined_call_operand.vmem [shape: f32[1,128], index: 4, kind: input, shape index: {}]   ;;  %s1199_s5 = inlined_call_operand.vmem [shape: f32[32,128], index: 5, kind: output, shape index: {}]  }
   0x1   :  { %v833_v0 = vld [vmem:[%s1194_s1 + $0x4] ss:$12 sps:$4 sm:$0xff]   ;;  %280 = vmatprep.mubr.bf16.mxu0 %v897_v1  ;;  %v835_v2 = vld [vmem:[%s1194_s1 + $0x8] ss:$12 sps:$4 sm:$0xff]   ;;  %v836_v3 = vld [vmem:[%s1194_s1] ss:$12 sps:$4 sm:$0xff]  }
   0x2   :  { %248 = vmatprep.subr.bf16.mxu0 %v833_v0  ;;  %792 = vmatprep.subr.bf16.mxu1 %v835_v2  ;;  %v837_v4 = vld [vmem:[%s1194_s1 + $0x1c] ss:$12 sps:$4 sm:$0xff]   ;;  %v839_v5 = vld [vmem:[%s1194_s1 + $0x20] ss:$12 sps:$4 sm:$0xff]   ;;  %v840_v6 = vld [vmem:[%s1194_s1 + $0x18] ss:$12 sps:$4 sm:$0xff]  }
   0x3   :  { %249 = vmatpush1.bf16.msra.mxu0 %v836_v3  ;;  %793 = vmatpush3.bf16.msra.mxu1 %v835_v2  ;;  %v841_v7 = vld [vmem:[%s1194_s1 + $0x34] ss:$12 sps:$4 sm:$0xff]   ;;  %v843_v8 = vld [vmem:[%s1194_s1 + $0x38] ss:$12 sps:$4 sm:$0xff]   ;;  %v844_v9 = vld [vmem:[%s1194_s1 + $0x30] ss:$12 sps:$4 sm:$0xff]  }
   0x4   :  { %250 = vmatprep.subr.bf16.mxu0 %v837_v4  ;;  %794 = vmatprep.subr.bf16.mxu1 %v839_v5  ;;  %v845_v10 = vld [vmem:[%s1194_s1 + $0x4c] ss:$12 sps:$4 sm:$0xff]   ;;  %v847_v11 = vld [vmem:[%s1194_s1 + $0x50] ss:$12 sps:$4 sm:$0xff]   ;;  %v848_v12 = vld [vmem:[%s1194_s1 + $0x48] ss:$12 sps:$4 sm:$0xff]  }
   0x5   :  { %v849_v13 = vld [vmem:[%s1194_s1 + $0x64] ss:$12 sps:$4 sm:$0xff]   ;;  %v851_v14 = vld [vmem:[%s1194_s1 + $0x68] ss:$12 sps:$4 sm:$0xff]   ;;  %v852_v15 = vld [vmem:[%s1194_s1 + $0x60] ss:$12 sps:$4 sm:$0xff]  }
   0x6   :  { %v853_v16 = vld [vmem:[%s1194_s1 + $0x7c] ss:$12 sps:$4 sm:$0xff]   ;;  %v855_v17 = vld [vmem:[%s1194_s1 + $0x80] ss:$12 sps:$4 sm:$0xff]   ;;  %v856_v19 = vld [vmem:[%s1194_s1 + $0x78] ss:$12 sps:$4 sm:$0xff]  }
   0x7   :  { %251 = vmatpush1.bf16.msra.mxu0 %v840_v6  ;;  %795 = vmatpush3.bf16.msra.mxu1 %v839_v5  ;;  %v983_v18 = vld [vmem:[%s1195_s0] sm:$0xff]  ;;  %v991_v20 = vld [vmem:[%s1195_s0 + $0x8] sm:$0xff]  ;;  %v860_v24 = vld [vmem:[%s1194_s1 + $0x90] ss:$12 sps:$4 sm:$0xff]   ;;  %v1099_v56 = vshrl.u32 %v21_v55, 7 }
   0x8   :  { %252 = vmatprep.subr.bf16.mxu0 %v841_v7  ;;  %796 = vmatprep.subr.bf16.mxu1 %v843_v8  ;;  %v857_v21 = vld [vmem:[%s1194_s1 + $0x94] ss:$12 sps:$4 sm:$0xff]   ;;  %v86_v22 = vpack.c.bf16 %v991_v20, %v983_v18  ;;  %v859_v23 = vld [vmem:[%s1194_s1 + $0x98] ss:$12 sps:$4 sm:$0xff]   ;;  %v863_v26 = vld [vmem:[%s1194_s1 + $0xb0] ss:$12 sps:$4 sm:$0xff]  }
   0x9   :  { %v861_v25 = vld [vmem:[%s1194_s1 + $0xac] ss:$12 sps:$4 sm:$0xff]   ;;  %v864_v27 = vld [vmem:[%s1194_s1 + $0xa8] ss:$12 sps:$4 sm:$0xff]   ;;  %v867_v30 = vld [vmem:[%s1196_s2 + $0x4] ss:$12 sps:$4 sm:$0xff]  }
   0xa   :  { %808 = vmatprep.mubr.bf16.mxu1 %v86_v22  ;;  %v1016_v28 = vld [vmem:[%s1195_s0 + $0x10] sm:$0xff]  ;;  %v1021_v29 = vld [vmem:[%s1195_s0 + $0x18] sm:$0xff]  ;;  %v865_v33 = vld [vmem:[%s1196_s2] ss:$12 sps:$4 sm:$0xff]   ;;  %v23_v57 = vadd.s32 8, %v1099_v56  ;;  %v24_v63 = vadd.s32 16, %v1099_v56 }
   0xb   :  { %253 = vmatpush1.bf16.msra.mxu0 %v844_v9  ;;  %797 = vmatpush3.bf16.msra.mxu1 %v843_v8  ;;  %v868_v31 = vld [vmem:[%s1196_s2 + $0x8] ss:$12 sps:$4 sm:$0xff]   ;;  %v87_v32 = vpack.c.bf16 %v1021_v29, %v1016_v28  ;;  %v872_v35 = vld [vmem:[%s1196_s2 + $0x20] ss:$12 sps:$4 sm:$0xff]   ;;  %v869_v36 = vld [vmem:[%s1196_s2 + $0x18] ss:$12 sps:$4 sm:$0xff]  }
   0xc   :  { %254 = vmatprep.subr.bf16.mxu0 %v845_v10  ;;  %798 = vmatprep.subr.bf16.mxu1 %v847_v11  ;;  %v871_v34 = vld [vmem:[%s1196_s2 + $0x1c] ss:$12 sps:$4 sm:$0xff]   ;;  %v875_v37 = vld [vmem:[%s1196_s2 + $0x34] ss:$12 sps:$4 sm:$0xff]   ;;  %v876_v39 = vld [vmem:[%s1196_s2 + $0x38] ss:$12 sps:$4 sm:$0xff]  }
   0xd   :  { %v873_v38 = vld [vmem:[%s1196_s2 + $0x30] ss:$12 sps:$4 sm:$0xff]   ;;  %v879_v40 = vld [vmem:[%s1196_s2 + $0x4c] ss:$12 sps:$4 sm:$0xff]   ;;  %v877_v41 = vld [vmem:[%s1196_s2 + $0x48] ss:$12 sps:$4 sm:$0xff]  }
   0xe   :  { %v880_v42 = vld [vmem:[%s1196_s2 + $0x50] ss:$12 sps:$4 sm:$0xff]   ;;  %v881_v44 = vld [vmem:[%s1196_s2 + $0x60] ss:$12 sps:$4 sm:$0xff]   ;;  %v884_v45 = vld [vmem:[%s1196_s2 + $0x68] ss:$12 sps:$4 sm:$0xff]  }
   0xf   :  { %255 = vmatpush1.bf16.msra.mxu0 %v848_v12  ;;  %799 = vmatpush3.bf16.msra.mxu1 %v847_v11  ;;  %v883_v43 = vld [vmem:[%s1196_s2 + $0x64] ss:$12 sps:$4 sm:$0xff]   ;;  %v887_v46 = vld [vmem:[%s1196_s2 + $0x7c] ss:$12 sps:$4 sm:$0xff]   ;;  %v888_v48 = vld [vmem:[%s1196_s2 + $0x80] ss:$12 sps:$4 sm:$0xff]  }
  0x10   :  { %256 = vmatprep.subr.bf16.mxu0 %v849_v13  ;;  %800 = vmatprep.subr.bf16.mxu1 %v851_v14  ;;  %v885_v47 = vld [vmem:[%s1196_s2 + $0x78] ss:$12 sps:$4 sm:$0xff]   ;;  %v891_v49 = vld [vmem:[%s1196_s2 + $0x94] ss:$12 sps:$4 sm:$0xff]   ;;  %v889_v50 = vld [vmem:[%s1196_s2 + $0x90] ss:$12 sps:$4 sm:$0xff]  }
  0x11   :  { %v892_v51 = vld [vmem:[%s1196_s2 + $0x98] ss:$12 sps:$4 sm:$0xff]   ;;  %v893_v53 = vld [vmem:[%s1196_s2 + $0xa8] ss:$12 sps:$4 sm:$0xff]   ;;  %v896_v54 = vld [vmem:[%s1196_s2 + $0xb0] ss:$12 sps:$4 sm:$0xff]  }
  0x12   :  { %v895_v52 = vld [vmem:[%s1196_s2 + $0xac] ss:$12 sps:$4 sm:$0xff]   ;;  %v37_v60 = vand.u32 15, %v23_v57  ;;  %vm354_vm0 = vcmp.lt.s32.totalorder %v1099_v56, 1  ;;  %vm367_vm1 = vcmp.lt.s32.totalorder %v1099_v56, 7  ;;  %v25_v12 = vadd.s32 24, %v1099_v56 }
  0x13   :  { %257 = vmatpush1.bf16.msra.mxu0 %v852_v15  ;;  %801 = vmatpush3.bf16.msra.mxu1 %v851_v14  ;;  %v44_v14 = vand.u32 15, %v24_v63 }
  0x14   :  { %258 = vmatprep.subr.bf16.mxu0 %v853_v16  ;;  %802 = vmatprep.subr.bf16.mxu1 %v855_v17  ;;  %vm1105_vm2 = vcmp.ne.s32.totalorder %v37_v60, 15 }
  0x15   :  { %vm1123_vm3 = vcmp.ne.s32.totalorder %v44_v14, 0 }
  0x17   :  { %259 = vmatpush1.bf16.msra.mxu0 %v856_v19  ;;  %803 = vmatpush3.bf16.msra.mxu1 %v855_v17 }
  0x18   :  { %260 = vmatprep.subr.bf16.mxu0 %v857_v21  ;;  %804 = vmatprep.subr.bf16.mxu1 %v859_v23 }
  0x1b   :  { %261 = vmatpush1.bf16.msra.mxu0 %v860_v24  ;;  %805 = vmatpush3.bf16.msra.mxu1 %v859_v23  ;;  %v30_v23 = vand.u32 15, %v1099_v56 }
  0x1c   :  { %262 = vmatprep.subr.bf16.mxu0 %v861_v25  ;;  %806 = vmatprep.subr.bf16.mxu1 %v863_v26 }
  0x1d   :  { %vm1129_vm4 = vcmp.ne.s32.totalorder %v30_v23, 0 }
  0x1f   :  { %263 = vmatpush1.bf16.msra.mxu0 %v864_v27  ;;  %807 = vmatpush3.bf16.msra.mxu1 %v863_v26  ;;  %v51_v26 = vand.u32 15, %v25_v12 }
  0x20   :  { %561 = vmatprep.subr.bf16.mxu0 %v867_v30  ;;  %812 = vmatprep.subr.bf16.mxu1 %v868_v31 }
  0x21   :  { %vm1135_vm5 = vcmp.ne.s32.totalorder %v51_v26, 15 }
  0x22   :  { %281 = vmatmul.mubr.bf16.vlgmr.msra.gmra.mrb[0].mxu0 %v86_v22  ;;  %809 = vmatmul.mubr.bf16.vlgmr.msra.gmra.mrb[0].mxu1 %v87_v32 }
  0x23   :  { %290 = vmatprep.mubr.bf16.mxu0 %v897_v1  ;;  %562 = vmatpush1.bf16.msra.mxu0 %v865_v33 }
  0x24   :  { %813 = vmatpush3.bf16.msra.mxu1 %v868_v31  ;;  %563 = vmatprep.subr.bf16.mxu0 %v871_v34 }
  0x25   :  { %814 = vmatprep.subr.bf16.mxu1 %v872_v35 }
  0x27   :  { %564 = vmatpush1.bf16.msra.mxu0 %v869_v36 }
  0x28   :  { %815 = vmatpush3.bf16.msra.mxu1 %v872_v35  ;;  %565 = vmatprep.subr.bf16.mxu0 %v875_v37 }
  0x29   :  { %816 = vmatprep.subr.bf16.mxu1 %v876_v39 }
  0x2a   :  { %291 = vmatmul.mubr.bf16.gmra.mrb[4].mxu0 %v87_v32 }
  0x2b   :  { %593 = vmatprep.mubr.bf16.mxu0 %v897_v1  ;;  %566 = vmatpush1.bf16.msra.mxu0 %v873_v38 }
  0x2c   :  { %817 = vmatpush3.bf16.msra.mxu1 %v876_v39  ;;  %567 = vmatprep.subr.bf16.mxu0 %v879_v40 }
  0x2d   :  { %818 = vmatprep.subr.bf16.mxu1 %v880_v42 }
  0x2f   :  { %568 = vmatpush1.bf16.msra.mxu0 %v877_v41 }
  0x30   :  { %819 = vmatpush3.bf16.msra.mxu1 %v880_v42  ;;  %569 = vmatprep.subr.bf16.mxu0 %v883_v43  ;;  %v746_v42 = vld [vmem:[%s1197_s3] ss:$0 sm:$0xff] }
  0x31   :  { %820 = vmatprep.subr.bf16.mxu1 %v884_v45 }
  0x33   :  { %570 = vmatpush1.bf16.msra.mxu0 %v881_v44 }
  0x34   :  { %821 = vmatpush3.bf16.msra.mxu1 %v884_v45  ;;  %571 = vmatprep.subr.bf16.mxu0 %v887_v46 }
  0x35   :  { %822 = vmatprep.subr.bf16.mxu1 %v888_v48 }
  0x37   :  { %572 = vmatpush1.bf16.msra.mxu0 %v885_v47 }
  0x38   :  { %823 = vmatpush3.bf16.msra.mxu1 %v888_v48  ;;  %573 = vmatprep.subr.bf16.mxu0 %v891_v49 }
  0x39   :  { %824 = vmatprep.subr.bf16.mxu1 %v892_v51 }
  0x3b   :  { %574 = vmatpush1.bf16.msra.mxu0 %v889_v50 }
  0x3c   :  { %825 = vmatpush3.bf16.msra.mxu1 %v892_v51  ;;  %575 = vmatprep.subr.bf16.mxu0 %v895_v52 }
  0x3d   :  { %826 = vmatprep.subr.bf16.mxu1 %v896_v54 }
  0x3f   :  { %576 = vmatpush1.bf16.msra.mxu0 %v893_v53 }
  0x40   :  { %827 = vmatpush3.bf16.msra.mxu1 %v896_v54 }
  0xf5   :  { %v282_v58 = vpop.f32.mrb[0].mxu0  ;;  %v810_v59 = vpop.f32.mrb[0].mxu1 }
  0xf6   :  { %v284_v61 = vpop.f32.mrb[1].mxu0  ;;  %v335_v62 = vpop.f32.mrb[1].mxu1  ;;  %v365_v0 = vrot.slane %v810_v59, 1  ;;  %v350_v5 = vrot.slane %v282_v58, 7 }
  0xf7   :  { %v363_v2 = vrot.slane %v335_v62, 1  ;;  %v286_v3 = vpop.f32.mrb[2].mxu0  ;;  %v811_v4 = vpop.f32.mrb[2].mxu1 }
  0xf8   :  { %v351_v6 = vrot.slane %v286_v3, 7  ;;  %v366_v7 = vrot.slane %v811_v4, 1  ;;  %v288_v8 = vpop.f32.mrb[3].mxu0  ;;  %v338_v9 = vpop.f32.mrb[3].mxu1 }
  0xf9   :  { %v364_v11 = vrot.slane %v338_v9, 1 }
  0xfa   :  { %v357_v13 = vsel %vm354_vm0, %v350_v5, %v351_v6  ;;  %v368_v15 = vsel %vm367_vm1, %v365_v0, %v366_v7  ;;  %v371_v16 = vsel %vm367_vm1, %v366_v7, %v363_v2 }
  0xfb   :  { %v377_v17 = vadd.f32 %v357_v13, %v288_v8  ;;  %v369_v19 = vsel %vm367_vm1, %v364_v11, %v365_v0  ;;  %v370_v21 = vsel %vm367_vm1, %v363_v2, %v364_v11  ;;  %v375_v47 = vsel %vm1135_vm5, %v371_v16, 0.0 }
  0xfc   :  { %v373_v22 = vsel %vm1105_vm2, %v369_v19, 0.0 }
  0xfd   :  { %v381_v24 = vadd.f32 %v377_v17, %v373_v22  ;;  %v292_v25 = vpop.f32.mrb[4].mxu0 }
  0xfe   :  { %v352_v27 = vrot.slane %v292_v25, 7  ;;  %v294_v31 = vpop.f32.mrb[5].mxu0 }
  0xff   :  { %v296_v32 = vpop.f32.mrb[6].mxu0  ;;  %v392_v49 = vadd.f32 %v746_v42, %v381_v24 }
 0x100   :  { %v356_v33 = vsel %vm354_vm0, %v351_v6, %v352_v27  ;;  %v353_v35 = vrot.slane %v296_v32, 7  ;;  %v298_v36 = vpop.f32.mrb[7].mxu0 }
 0x101   :  { %v361_v37 = vsel %vm1123_vm3, %v356_v33, 0.0  ;;  %v396_v57 = vmax.f32 %v392_v49, 0.0 }
 0x102   :  { %v378_v39 = vadd.f32 %v361_v37, %v294_v31  ;;  %v358_v40 = vsel %vm354_vm0, %v353_v35, %v350_v5  ;;  %v355_v41 = vsel %vm354_vm0, %v352_v27, %v353_v35 }
 0x103   :  { %v359_v43 = vsel %vm1129_vm4, %v358_v40, 0.0  ;;  %v379_v44 = vadd.f32 %v355_v41, %v298_v36 }
 0x104   :  { %v382_v45 = vadd.f32 %v378_v39, %v368_v15  ;;  %v376_v46 = vadd.f32 %v359_v43, %v284_v61 }
 0x105   :  { %v383_v48 = vadd.f32 %v379_v44, %v375_v47 }
 0x106   :  { %v393_v50 = vadd.f32 %v746_v42, %v382_v45  ;;  %v380_v51 = vadd.f32 %v376_v46, %v370_v21  ;;  %v771_v21 = vld [vmem:[%s1198_s4] ss:$0 sm:$0xff] }
 0x107   :  { %v394_v52 = vadd.f32 %v746_v42, %v383_v48 }
 0x108   :  { %v397_v53 = vmax.f32 %v393_v50, 0.0  ;;  %v391_v54 = vadd.f32 %v746_v42, %v380_v51 }
 0x109   :  { %v398_v55 = vmax.f32 %v394_v52, 0.0 }
 0x10a   :  { %v395_v58 = vmax.f32 %v391_v54, 0.0 }
 0x10b   :  { %v400_v59 = vpack.c.bf16 %v398_v55, %v397_v53 }
 0x10c   :  { %v399_v60 = vpack.c.bf16 %v396_v57, %v395_v58 }
 0x10e   :  { %594 = vmatmul.mubr.bf16.vlgmr.msra.gmra.mrb[8].mxu0 %v399_v60  ;;  %828 = vmatprep.mubr.bf16.mxu1 %v399_v60 }
 0x10f   :  { %829 = vmatmul.mubr.bf16.vlgmr.msra.gmra.mrb[4].mxu1 %v400_v59  ;;  %603 = vmatprep.mubr.bf16.mxu0 %v897_v1 }
 0x116   :  { %604 = vmatmul.mubr.bf16.gmra.mrb[12].mxu0 %v400_v59 }
 0x1e1   :  { %v595_v61 = vpop.f32.mrb[8].mxu0 }
 0x1e2   :  { %v597_v62 = vpop.f32.mrb[9].mxu0  ;;  %v830_v63 = vpop.f32.mrb[4].mxu1  ;;  %v663_v3 = vrot.slane %v595_v61, 7 }
 0x1e3   :  { %v599_v0 = vpop.f32.mrb[10].mxu0  ;;  %v648_v2 = vpop.f32.mrb[5].mxu1  ;;  %v677_v8 = vrot.slane %v830_v63, 1 }
 0x1e4   :  { %v664_v4 = vrot.slane %v599_v0, 7  ;;  %v675_v5 = vrot.slane %v648_v2, 1  ;;  %v601_v6 = vpop.f32.mrb[11].mxu0  ;;  %v831_v7 = vpop.f32.mrb[6].mxu1 }
 0x1e5   :  { %v678_v9 = vrot.slane %v831_v7, 1  ;;  %v651_v11 = vpop.f32.mrb[7].mxu1 }
 0x1e6   :  { %v669_v12 = vsel %vm354_vm0, %v663_v3, %v664_v4  ;;  %v676_v13 = vrot.slane %v651_v11, 1 }
 0x1e7   :  { %v688_v14 = vadd.f32 %v669_v12, %v601_v6  ;;  %v679_v1 = vsel %vm367_vm1, %v677_v8, %v678_v9  ;;  %v682_v15 = vsel %vm367_vm1, %v678_v9, %v675_v5 }
 0x1e8   :  { %v680_v16 = vsel %vm367_vm1, %v676_v13, %v677_v8  ;;  %v681_v17 = vsel %vm367_vm1, %v675_v5, %v676_v13  ;;  %v686_v30 = vsel %vm1135_vm5, %v682_v15, 0.0 }
 0x1e9   :  { %v684_v19 = vsel %vm1105_vm2, %v680_v16, 0.0  ;;  %v605_v22 = vpop.f32.mrb[12].mxu0 }
 0x1ea   :  { %v692_v23 = vadd.f32 %v688_v14, %v684_v19  ;;  %v665_v24 = vrot.slane %v605_v22, 7  ;;  %v607_v25 = vpop.f32.mrb[13].mxu0 }
 0x1eb   :  { %v609_v26 = vpop.f32.mrb[14].mxu0 }
 0x1ec   :  { %v703_v27 = vadd.f32 %v771_v21, %v692_v23  ;;  %v668_v31 = vsel %vm354_vm0, %v664_v4, %v665_v24  ;;  %v666_v32 = vrot.slane %v609_v26, 7  ;;  %v611_v33 = vpop.f32.mrb[15].mxu0 }
 0x1ed   :  { %v673_v35 = vsel %vm1123_vm3, %v668_v31, 0.0 }
 0x1ee   :  { %v707_v10 = vadd.f32 %v703_v27, %v991_v20  ;;  %v689_v36 = vadd.f32 %v673_v35, %v607_v25  ;;  %v670_v37 = vsel %vm354_vm0, %v666_v32, %v663_v3  ;;  %v667_v39 = vsel %vm354_vm0, %v665_v24, %v666_v32 }
 0x1ef   :  { %v671_v40 = vsel %vm1129_vm4, %v670_v37, 0.0  ;;  %v690_v41 = vadd.f32 %v667_v39, %v611_v33 }
 0x1f0   :  { %v711_v42 = vmax.f32 %v707_v10, 0.0  ;;  %v693_v43 = vadd.f32 %v689_v36, %v679_v1  ;;  %v687_v44 = vadd.f32 %v671_v40, %v597_v62 }
 0x1f1   :  { %v694_v45 = vadd.f32 %v690_v41, %v686_v30 }
 0x1f2   :  { %715 = vst [vmem:[%s1199_s5 + $0x8] sm:$0xff] %v711_v42  ;;  %v704_v20 = vadd.f32 %v771_v21, %v693_v43  ;;  %v691_v46 = vadd.f32 %v687_v44, %v681_v17 }
 0x1f3   :  { %v705_v47 = vadd.f32 %v771_v21, %v694_v45 }
 0x1f4   :  { %v708_v56 = vadd.f32 %v704_v20, %v1016_v28  ;;  %v702_v48 = vadd.f32 %v771_v21, %v691_v46 }
 0x1f5   :  { %v709_v34 = vadd.f32 %v705_v47, %v1021_v29 }
 0x1f6   :  { %v712_v49 = vmax.f32 %v708_v56, 0.0  ;;  %v706_v50 = vadd.f32 %v702_v48, %v983_v18 }
 0x1f7   :  { %v713_v51 = vmax.f32 %v709_v34, 0.0 }
 0x1f8   :  { %716 = vst [vmem:[%s1199_s5 + $0x10] sm:$0xff] %v712_v49  ;;  %v710_v38 = vmax.f32 %v706_v50, 0.0 }
 0x1f9   :  { %717 = vst [vmem:[%s1199_s5 + $0x18] sm:$0xff] %v713_v51 }
 0x1fa   :  { %714 = vst [vmem:[%s1199_s5] sm:$0xff] %v710_v38 }

</bundles_post_ra>
